<compile_context>
chip_gen: v5e
topology: v5e:2x2
jax: 0.10.0
libtpu: 0.0.40
codegen_flags: <defaults>
</compile_context>

<pallas_src>
import math
from functools import partial

import numpy as np
import jax
import jax.numpy as jnp
from jax import lax
from jax.experimental import pallas as pl
from jax.experimental.pallas import tpu as pltpu

_VMEM_LIMIT = 64 * 1024 * 1024      # <= physical VMEM on v5e/v6e (128 MiB) and v7x (64 MiB)
_SQRT1_2 = 1.0 / math.sqrt(2.0)


def _cparams():
    return pltpu.CompilerParams(dimension_semantics=("parallel",),
                                vmem_limit_bytes=_VMEM_LIMIT)


# ----------------------------------------------------------------------------
# helpers: tiling / padding
# ----------------------------------------------------------------------------

def _row_tile(M, cap=512):
    """Row tile: multiple of 8, <= cap, preferring >=2 grid steps (megacore)."""
    m8 = -(-M // 8) * 8
    if m8 > cap:
        return cap
    if m8 <= 16:
        return m8
    half = -(-m8 // 2)
    return -(-half // 8) * 8


def _pad_rows(x2d, tm):
    M = x2d.shape[0]
    Mp = -(-M // tm) * tm
    if Mp == M:
        return x2d
    return jnp.pad(x2d, ((0, Mp - M), (0, 0)))


def _batch_tile(BH, item_bytes, budget=4 << 20):
    """Largest divisor of BH whose block fits the budget, keeping grid >= 2 when BH >= 2."""
    best = 1
    for tb in range(1, BH + 1):
        if BH % tb:
            continue
        if tb * item_bytes > budget:
            continue
        if BH // tb >= 2 or BH == 1:
            best = tb
    return best


# ----------------------------------------------------------------------------
# Pallas kernels
# ----------------------------------------------------------------------------

def _erf_f32(x):
    # Abramowitz & Stegun 7.1.26, |err| <= 1.5e-7 (f32 stand-in for exact-erf GELU).
    a1, a2, a3, a4, a5 = 0.254829592, -0.284496736, 1.421413741, -1.453152027, 1.061405429
    p = 0.3275911
    s = jnp.where(x >= 0.0, 1.0, -1.0)
    ax = jnp.abs(x)
    t = 1.0 / (1.0 + p * ax)
    poly = ((((a5 * t + a4) * t + a3) * t + a2) * t + a1) * t
    return s * (1.0 - poly * jnp.exp(-ax * ax))


def _linear_kernel(x_ref, w_ref, b_ref, o_ref):
    # (TM, K)@(K, N) + (1, N); bf16 operands, f32 accumulation.
    acc = jnp.dot(x_ref[...].astype(jnp.bfloat16), w_ref[...],
                  preferred_element_type=jnp.float32)
    o_ref[...] = (acc + b_ref[...]).astype(o_ref.dtype)


def _ln_qkv_kernel(x_ref, g_ref, bt_ref, w_ref, o_ref, *, eps):
    # LayerNorm (f32) fused with the concatenated Q|K|V projection (bf16 MXU).
    x = x_ref[...]
    mu = jnp.mean(x, axis=-1, keepdims=True)
    var = jnp.mean(jnp.square(x - mu), axis=-1, keepdims=True)
    xn = (x - mu) * lax.rsqrt(var + eps) * g_ref[...] + bt_ref[...]
    o = jnp.dot(xn.astype(jnp.bfloat16), w_ref[...], preferred_element_type=jnp.float32)
    o_ref[...] = o.astype(o_ref.dtype)          # bf16 out (feeds attention matmuls)


def _proj_res_kernel(a_ref, w_ref, b_ref, r_ref, o_ref):
    # attn_out @ Wo + bo + residual, fused.
    acc = jnp.dot(a_ref[...], w_ref[...], preferred_element_type=jnp.float32)
    o_ref[...] = (acc + b_ref[...] + r_ref[...]).astype(o_ref.dtype)


def _ln_mlp_res_kernel(x_ref, g_ref, bt_ref, w1_ref, b1_ref, w2_ref, b2_ref, o_ref, *, eps):
    # LN2 + Linear + exact GELU + Linear + residual, all fused.
    # NOTE(perf/v7x): for large dim_model the resident w1/w2 should be tiled along the
    # hidden dim with an extra 'arbitrary' grid axis + f32 accumulator (64 MiB VMEM budget);
    # not needed at these shapes.
    x = x_ref[...]
    mu = jnp.mean(x, axis=-1, keepdims=True)
    var = jnp.mean(jnp.square(x - mu), axis=-1, keepdims=True)
    xn = (x - mu) * lax.rsqrt(var + eps) * g_ref[...] + bt_ref[...]
    h = jnp.dot(xn.astype(jnp.bfloat16), w1_ref[...],
                preferred_element_type=jnp.float32) + b1_ref[...]
    h = 0.5 * h * (1.0 + _erf_f32(h * _SQRT1_2))      # exact (erf) GELU, f32
    o = jnp.dot(h.astype(jnp.bfloat16), w2_ref[...],
                preferred_element_type=jnp.float32) + b2_ref[...]
    o_ref[...] = (o + x).astype(o_ref.dtype)


def _window_attn_kernel(q_ref, k_ref, v_ref, pb_ref, o_ref, *, shifted, window_w):
    # q/k/v block: (TB, n_wins, w2, dv) bf16; pb: (3, w2, w2) = [pos, lower_mask, right_mask].
    tb, n_wins, w2, dv = q_ref.shape
    q = q_ref[...].reshape(tb * n_wins, w2, dv)
    k = k_ref[...].reshape(tb * n_wins, w2, dv)
    v = v_ref[...].reshape(tb * n_wins, w2, dv)

    # scale is already folded into Wq, so scores = q @ k^T directly (f32 accumulate).
    s = jnp.einsum('nqd,nkd->nqk', q, k, preferred_element_type=jnp.float32)

    pos = pb_ref[0]                                            # (w2, w2)
    bias = jnp.broadcast_to(pos[None], (n_wins, w2, w2))
    if shifted:
        # scores[:, :, -window_w:] += lower_mask ; scores[:, :, window_w-1] += right_mask
        win_idx = lax.broadcasted_iota(jnp.int32, (n_wins, w2, w2), 0)
        zeros = jnp.zeros((n_wins, w2, w2), jnp.float32)
        lower = jnp.broadcast_to(pb_ref[1][None], (n_wins, w2, w2))
        right = jnp.broadcast_to(pb_ref[2][None], (n_wins, w2, w2))
        bias = bias + jnp.where(win_idx >= n_wins - window_w, lower, zeros)
        bias = bias + jnp.where(win_idx == window_w - 1, right, zeros)

    s = s.reshape(tb, n_wins, w2, w2) + bias[None]
    m = jnp.max(s, axis=-1, keepdims=True)
    p = jnp.exp(s - m)
    denom = jnp.sum(p, axis=-1, keepdims=True)
    attn = (p * pl.reciprocal(denom, approx=True)).astype(jnp.bfloat16)
    attn = attn.reshape(tb * n_wins, w2, w2)

    out = jnp.einsum('nqk,nkd->nqd', attn, v, preferred_element_type=jnp.float32)
    # lane-dense output slab: last dim w2*dv (>= 128 in practice) instead of dv.
    o_ref[...] = out.reshape(tb, n_wins, w2 * dv).astype(o_ref.dtype)


# ----------------------------------------------------------------------------
# Pallas wrappers
# ----------------------------------------------------------------------------

def linear(x2d, w_bf16, b):
    M, K = x2d.shape
    N = w_bf16.shape[1]
    TM = _row_tile(M)
    xp = _pad_rows(x2d, TM)
    Mp = xp.shape[0]
    out = pl.pallas_call(
        _linear_kernel,
        out_shape=jax.ShapeDtypeStruct((Mp, N), jnp.float32),
        grid=(Mp // TM,),
        in_specs=[pl.BlockSpec((TM, K), lambda i: (i, 0)),
                  pl.BlockSpec((K, N), lambda i: (0, 0)),
                  pl.BlockSpec((1, N), lambda i: (0, 0))],
        out_specs=pl.BlockSpec((TM, N), lambda i: (i, 0)),
        compiler_params=_cparams(),
        cost_estimate=pl.CostEstimate(flops=2 * Mp * K * N, transcendentals=0,
                                      bytes_accessed=Mp * K * 4 + K * N * 2 + Mp * N * 4),
    )(xp, w_bf16, b.reshape(1, N))
    return out[:M]


def ln_qkv(x2d, g, bt, wqkv_bf16, eps=1e-5):
    M, D = x2d.shape
    N3 = wqkv_bf16.shape[1]
    TM = _row_tile(M)
    xp = _pad_rows(x2d, TM)
    Mp = xp.shape[0]
    out = pl.pallas_call(
        partial(_ln_qkv_kernel, eps=eps),
        out_shape=jax.ShapeDtypeStruct((Mp, N3), jnp.bfloat16),
        grid=(Mp // TM,),
        in_specs=[pl.BlockSpec((TM, D), lambda i: (i, 0)),
                  pl.BlockSpec((1, D), lambda i: (0, 0)),
                  pl.BlockSpec((1, D), lambda i: (0, 0)),
                  pl.BlockSpec((D, N3), lambda i: (0, 0))],
        out_specs=pl.BlockSpec((TM, N3), lambda i: (i, 0)),
        compiler_params=_cparams(),
        cost_estimate=pl.CostEstimate(flops=2 * Mp * D * N3, transcendentals=Mp,
                                      bytes_accessed=Mp * D * 4 + D * N3 * 2 + Mp * N3 * 2),
    )(xp, g.reshape(1, D), bt.reshape(1, D), wqkv_bf16)
    return out[:M]


def proj_residual(a2d_bf16, wo_bf16, bo, res2d):
    M, K = a2d_bf16.shape
    N = wo_bf16.shape[1]
    TM = _row_tile(M)
    ap = _pad_rows(a2d_bf16, TM)
    rp = _pad_rows(res2d, TM)
    Mp = ap.shape[0]
    out = pl.pallas_call(
        _proj_res_kernel,
        out_shape=jax.ShapeDtypeStruct((Mp, N), jnp.float32),
        grid=(Mp // TM,),
        in_specs=[pl.BlockSpec((TM, K), lambda i: (i, 0)),
                  pl.BlockSpec((K, N), lambda i: (0, 0)),
                  pl.BlockSpec((1, N), lambda i: (0, 0)),
                  pl.BlockSpec((TM, N), lambda i: (i, 0))],
        out_specs=pl.BlockSpec((TM, N), lambda i: (i, 0)),
        compiler_params=_cparams(),
        cost_estimate=pl.CostEstimate(flops=2 * Mp * K * N, transcendentals=0,
                                      bytes_accessed=Mp * K * 2 + K * N * 2 + 2 * Mp * N * 4),
    )(ap, wo_bf16, bo.reshape(1, N), rp)
    return out[:M]


def ln_mlp_res(x2d, g, bt, w1_bf16, b1, w2_bf16, b2, eps=1e-5):
    M, D = x2d.shape
    H = w1_bf16.shape[1]
    TM = _row_tile(M)
    xp = _pad_rows(x2d, TM)
    Mp = xp.shape[0]
    out = pl.pallas_call(
        partial(_ln_mlp_res_kernel, eps=eps),
        out_shape=jax.ShapeDtypeStruct((Mp, D), jnp.float32),
        grid=(Mp // TM,),
        in_specs=[pl.BlockSpec((TM, D), lambda i: (i, 0)),
                  pl.BlockSpec((1, D), lambda i: (0, 0)),
                  pl.BlockSpec((1, D), lambda i: (0, 0)),
                  pl.BlockSpec((D, H), lambda i: (0, 0)),
                  pl.BlockSpec((1, H), lambda i: (0, 0)),
                  pl.BlockSpec((H, D), lambda i: (0, 0)),
                  pl.BlockSpec((1, D), lambda i: (0, 0))],
        out_specs=pl.BlockSpec((TM, D), lambda i: (i, 0)),
        compiler_params=_cparams(),
        cost_estimate=pl.CostEstimate(flops=4 * Mp * D * H, transcendentals=Mp * H + Mp,
                                      bytes_accessed=2 * Mp * D * 4 + 4 * D * H * 2),
    )(xp, g.reshape(1, D), bt.reshape(1, D),
      w1_bf16, b1.reshape(1, H), w2_bf16, b2.reshape(1, D))
    return out[:M]


def window_attention(q, k, v, bias3, *, shifted, window_w):
    """q/k/v: (B*heads, n_wins, w2, dv) bf16; bias3: (3, w2, w2) = [pos, lower, right]."""
    BH, n_wins, w2, dv = q.shape
    item_bytes = n_wins * w2 * dv * 2 * 4 + n_wins * w2 * w2 * 4     # q/k/v/out + scores
    TB = _batch_tile(BH, item_bytes)
    qkv_spec = pl.BlockSpec((TB, n_wins, w2, dv), lambda i: (i, 0, 0, 0))
    out = pl.pallas_call(
        partial(_window_attn_kernel, shifted=shifted, window_w=window_w),
        out_shape=jax.ShapeDtypeStruct((BH, n_wins, w2 * dv), jnp.bfloat16),
        grid=(BH // TB,),
        in_specs=[qkv_spec, qkv_spec, qkv_spec,
                  pl.BlockSpec((3, w2, w2), lambda i: (0, 0, 0))],
        out_specs=pl.BlockSpec((TB, n_wins, w2 * dv), lambda i: (i, 0, 0)),
        compiler_params=_cparams(),
        cost_estimate=pl.CostEstimate(
            flops=4 * BH * n_wins * w2 * w2 * dv,
            transcendentals=BH * n_wins * w2 * (w2 + 1),
            bytes_accessed=4 * BH * n_wins * w2 * dv * 2 + 3 * w2 * w2 * 4),
    )(q, k, v, bias3)
    return out


# ----------------------------------------------------------------------------
# Module glue (reshapes, masks, weight packing) in plain JAX / numpy
# ----------------------------------------------------------------------------

def generate_mask_np(window_size, displacement, upper_lower=False, left_right=False):
    w2 = window_size ** 2
    mask = np.zeros((w2, w2), np.float32)
    if upper_lower:
        mask[-displacement * window_size:, :-displacement * window_size] = -np.inf
        mask[:-displacement * window_size, -displacement * window_size:] = -np.inf
    if left_right:
        m = mask.reshape(window_size, window_size, window_size, window_size)
        m[:, -displacement:, :, :-displacement] = -np.inf
        m[:, :-displacement, :, -displacement:] = -np.inf
        mask = m.reshape(w2, w2)
    return mask


def _pos_table(pos_embedding, windows, relative_pos):
    if relative_pos:
        idxs = np.array([[x, y] for x in range(windows) for y in range(windows)])
        rel = idxs[None, :, :] - idxs[:, None, :] + windows - 1     # (w2, w2, 2)
        return pos_embedding[rel[..., 0], rel[..., 1]]              # (w2, w2)
    return pos_embedding


def _bias_stack(pos_tbl, windows, shifted):
    w2 = windows * windows
    if shifted:
        d = windows // 2
        lower = jnp.asarray(generate_mask_np(windows, d, upper_lower=True))
        right = jnp.asarray(generate_mask_np(windows, d, left_right=True))
    else:
        lower = jnp.zeros((w2, w2), jnp.float32)
        right = jnp.zeros((w2, w2), jnp.float32)
    return jnp.stack([pos_tbl.astype(jnp.float32), lower, right], axis=0)   # (3, w2, w2)


def _pack_block(blk, scale):
    # fuse Q|K|V into one bf16 weight; fold the attention scale (reference uses *sqrt(dv))
    # into Wq so no in-kernel score scaling is needed.
    wqkv = jnp.concatenate([blk['wq'] * scale, blk['wk'], blk['wv']], axis=1).astype(jnp.bfloat16)
    return dict(
        ln1_w=blk['ln1_w'], ln1_b=blk['ln1_b'], wqkv=wqkv, pos=blk['pos'],
        wo=blk['wo'].astype(jnp.bfloat16), bo=blk['bo'],
        ln2_w=blk['ln2_w'], ln2_b=blk['ln2_b'],
        w1=blk['w1'].astype(jnp.bfloat16), b1=blk['b1'],
        w2=blk['w2'].astype(jnp.bfloat16), b2=blk['b2'],
    )


def patch_embed(x_nchw, w_bf16, b, df):
    # nn.Unfold(df, stride=df) + view + permute + Linear
    n, c, h, wid = x_nchw.shape
    nh, nw = h // df, wid // df
    x = x_nchw.reshape(n, c, nh, df, nw, df)
    x = jnp.transpose(x, (0, 1, 3, 5, 2, 4))           # n, c, ki, kj, nh, nw
    x = x.reshape(n, c * df * df, nh, nw)              # == unfold(...).view(n, -1, nh, nw)
    x = jnp.transpose(x, (0, 2, 3, 1))                 # n, nh, nw, c*df^2
    y = linear(x.reshape(n * nh * nw, c * df * df), w_bf16, b)
    return y.reshape(n, nh, nw, -1)


def swin_block(x, p, *, shifted, windows, n_head, dim_v, relative_pos):
    b, n_h, n_w, dm = x.shape
    rows = b * n_h * n_w
    hd = n_head * dim_v
    window_h, window_w = n_h // windows, n_w // windows
    n_wins = window_h * window_w
    w2 = windows * windows

    # --- (shift) + LN1 + QKV + window-MHA + proj + residual ---
    # LN is per-position so it commutes with the cyclic shift: roll first, then fused LN+QKV.
    if shifted:
        disp = -windows // 2                       # matches PyTorch CyclicShift(-windows // 2)
        xs = jnp.roll(x, shift=(disp, disp), axis=(1, 2))
    else:
        xs = x
    xs2 = xs.reshape(rows, dm)

    qkv = ln_qkv(xs2, p['ln1_w'], p['ln1_b'], p['wqkv'])          # (rows, 3*hd) bf16
    # raw `.view(...)`-style reshapes, byte-matching the PyTorch reference
    q = qkv[:, :hd].reshape(b * n_head, n_wins, w2, dim_v)
    k = qkv[:, hd:2 * hd].reshape(b * n_head, n_wins, w2, dim_v)
    v = qkv[:, 2 * hd:].reshape(b * n_head, n_wins, w2, dim_v)

    bias3 = _bias_stack(_pos_table(p['pos'], windows, relative_pos), windows, shifted)
    attn = window_attention(q, k, v, bias3, shifted=shifted, window_w=window_w)
    attn2d = attn.reshape(rows, hd)                               # == out.view(b, n_h, n_w, -1)

    # residual is added in the rolled frame (xs == roll(residual)); rolling the sum back
    # gives exactly cycle_shift_re(fc(out)) + residual.
    out = proj_residual(attn2d, p['wo'], p['bo'], xs2).reshape(b, n_h, n_w, dm)
    if shifted:
        rev = windows // 2
        out = jnp.roll(out, shift=(rev, rev), axis=(1, 2))
    x = out

    # --- LN2 + MLP + residual (single fused kernel) ---
    x2d = ln_mlp_res(x.reshape(rows, dm), p['ln2_w'], p['ln2_b'],
                     p['w1'], p['b1'], p['w2'], p['b2'])
    return x2d.reshape(b, n_h, n_w, dm)


def stage_block_forward(x_nchw, params, cfg):
    scale = cfg['dim_v'] ** 0.5                    # reference: scores * dim_v**0.5 (kept as-is)
    x = patch_embed(x_nchw, params['pe_w'].astype(jnp.bfloat16), params['pe_b'], cfg['df'])
    for i, blk in enumerate(params['blocks']):
        shifted = (i % 2 == 1)                     # SwinBlocks alternate: W-MSA, SW-MSA, ...
        pb = _pack_block(blk, scale)
        x = swin_block(x, pb, shifted=shifted, windows=cfg['windows'],
                       n_head=cfg['n_head'], dim_v=cfg['dim_v'],
                       relative_pos=cfg['relative_pos'])
    return jnp.transpose(x, (0, 3, 1, 2))          # back to NCHW


# ----------------------------------------------------------------------------
# Deterministic parameter construction (synthetic init; no checkpoint load)
# ----------------------------------------------------------------------------

def init_params(key, cfg):
    in_c, dm, df = cfg['in_channels'], cfg['dim_model'], cfg['df']
    n_head, dim_v, windows = cfg['n_head'], cfg['dim_v'], cfg['windows']
    layers, relative_pos = cfg['layers'], cfg['relative_pos']
    assert layers % 2 == 0, 'stage layer must be even'
    hd = n_head * dim_v
    hidden = dm * 4

    keys = iter(jax.random.split(key, 2 + layers * 8))

    def nrm(shape, scale=0.02):
        return scale * jax.random.normal(next(keys), shape, jnp.float32)

    params = {
        'pe_w': nrm((in_c * df * df, dm)),
        'pe_b': jnp.zeros((dm,), jnp.float32),
        'blocks': [],
    }
    for _ in range(layers):
        if relative_pos:
            pos = jax.random.normal(next(keys), (2 * windows - 1, 2 * windows - 1), jnp.float32)
        else:
            pos = jax.random.normal(next(keys), (windows ** 2, windows ** 2), jnp.float32)
        params['blocks'].append({
            'ln1_w': jnp.ones((dm,), jnp.float32), 'ln1_b': jnp.zeros((dm,), jnp.float32),
            'wq': nrm((dm, hd)), 'wk': nrm((dm, hd)), 'wv': nrm((dm, hd)),
            'pos': pos,
            'wo': nrm((hd, dm)), 'bo': jnp.zeros((dm,), jnp.float32),
            'ln2_w': jnp.ones((dm,), jnp.float32), 'ln2_b': jnp.zeros((dm,), jnp.float32),
            'w1': nrm((dm, hidden)), 'b1': jnp.zeros((hidden,), jnp.float32),
            'w2': nrm((hidden, dm)), 'b2': jnp.zeros((dm,), jnp.float32),
        })
    return params


# TODO(synk): nn.Dropout and the extra nn.LayerNorm inside SWMulitHeadAttention are
# defined in __init__ but never used in forward(), so they are intentionally omitted.

if __name__ == "__main__":
    cfg = dict(in_channels=4, layers=2, dim_model=32, df=2,
               n_head=2, dim_v=16, windows=4, relative_pos=True)
    key = jax.random.PRNGKey(0)
    pkey, xkey = jax.random.split(key)
    params = init_params(pkey, cfg)

    x = jax.random.normal(xkey, (2, 4, 16, 16), jnp.float32)   # NCHW, like PyTorch
    out = stage_block_forward(x, params, cfg)
    out = jax.block_until_ready(out)

    assert out.shape == (2, cfg['dim_model'], 8, 8), out.shape
    assert bool(jnp.all(jnp.isfinite(out)))
    print("KERNEL_OK")
</pallas_src>

<mosaic_0001>
module attributes {stable_mosaic.version = 11 : i64} {
  func.func @_linear_kernel(%arg0: i32, %arg1: memref<64x16xf32, #tpu.memory_space<vmem>>, %arg2: memref<16x32xbf16, #tpu.memory_space<vmem>>, %arg3: memref<1x32xf32, #tpu.memory_space<vmem>>, %arg4: memref<64x32xf32, #tpu.memory_space<vmem>>) attributes {dimension_semantics = [#tpu.dimension_semantics<parallel>], iteration_bounds = array<i64: 2>, scalar_prefetch = 0 : i64, scratch_operands = 0 : i64, tpu.core_type = #tpu.core_type<tc>, window_params = [{transform_indices = @transform_0, window_bounds = array<i64: 64, 16>}, {pipeline_mode = #tpu.pipeline_mode<synchronous>, transform_indices = @transform_1, window_bounds = array<i64: 16, 32>}, {pipeline_mode = #tpu.pipeline_mode<synchronous>, transform_indices = @transform_2, window_bounds = array<i64: 1, 32>}, {transform_indices = @transform_3, window_bounds = array<i64: 64, 32>}]} {
    %c0 = arith.constant 0 : index
    %c0_0 = arith.constant 0 : index
    %0 = vector.load %arg1[%c0, %c0_0] : memref<64x16xf32, #tpu.memory_space<vmem>>, vector<64x16xf32>
    %1 = arith.truncf %0 : vector<64x16xf32> to vector<64x16xbf16>
    %c0_1 = arith.constant 0 : index
    %c0_2 = arith.constant 0 : index
    %2 = vector.load %arg2[%c0_1, %c0_2] : memref<16x32xbf16, #tpu.memory_space<vmem>>, vector<16x32xbf16>
    %cst = arith.constant dense<0.000000e+00> : vector<64x32xf32>
    %3 = tpu.matmul %1, %2, %cst {dimension_numbers = #tpu.dot_dimension_numbers<[1], [0], [0], [1], [0, 0, 1, 1], [], []>} : vector<64x16xbf16>, vector<16x32xbf16>, vector<64x32xf32> -> vector<64x32xf32>
    %c0_3 = arith.constant 0 : index
    %c0_4 = arith.constant 0 : index
    %4 = vector.load %arg3[%c0_3, %c0_4] : memref<1x32xf32, #tpu.memory_space<vmem>>, vector<1x32xf32>
    %5 = vector.broadcast %4 : vector<1x32xf32> to vector<64x32xf32>
    %6 = arith.addf %3, %5 : vector<64x32xf32>
    %c0_5 = arith.constant 0 : index
    %c0_6 = arith.constant 0 : index
    %7 = vector.load %arg4[%c0_5, %c0_6] : memref<64x32xf32, #tpu.memory_space<vmem>>, vector<64x32xf32>
    tpu.vector_store %arg4[%c0_5, %c0_6], %6 {strides = array<i32>} : memref<64x32xf32, #tpu.memory_space<vmem>>, vector<64x32xf32>,
    return
  }
  func.func @transform_0(%arg0: i32) -> (i32, i32) {
    %c0_i32 = arith.constant 0 : i32
    %c0_i32_0 = arith.constant 0 : i32
    return %arg0, %c0_i32 : i32, i32
  }
  func.func @transform_1(%arg0: i32) -> (i32, i32) {
    %c0_i32 = arith.constant 0 : i32
    %c0_i32_0 = arith.constant 0 : i32
    %c0_i32_1 = arith.constant 0 : i32
    return %c0_i32, %c0_i32_0 : i32, i32
  }
  func.func @transform_2(%arg0: i32) -> (i32, i32) {
    %c0_i32 = arith.constant 0 : i32
    %c0_i32_0 = arith.constant 0 : i32
    %c0_i32_1 = arith.constant 0 : i32
    return %c0_i32, %c0_i32_0 : i32, i32
  }
  func.func @transform_3(%arg0: i32) -> (i32, i32) {
    %c0_i32 = arith.constant 0 : i32
    %c0_i32_0 = arith.constant 0 : i32
    return %arg0, %c0_i32 : i32, i32
  }
}

</mosaic_0001>

<bundles_post_ra>
// kernel: tpu_custom_call.1
= control target key start
LH: loop header
LB: loop body
LE: loop exit
PB: predicated region body
PF: predicated region fallthrough
CT: control target
= control target key end

     0   :  { %s366_s12 = smov 0   ;;  %s397_s0 = inlined_call_operand.vmem [shape: f32[128,16], index: 0, kind: input, shape index: {}]   ;;  %s398_s1 = inlined_call_operand.vmem [shape: bf16[16,32], index: 1, kind: input, shape index: {}]   ;;  %s399_s2 = inlined_call_operand.vmem [shape: f32[1,32], index: 2, kind: input, shape index: {}]   ;;  %s400_s3 = inlined_call_operand.vmem [shape: f32[128,32], index: 3, kind: output, shape index: {}]  }
   0x1 LB: > { %s306_s13 = sadd.s32 4294967295, %s344_s12   ;;  %p310_p0 = scmp.ge.s32.totalorder %s344_s12, 1  ;;  %s344_s12 = sphi %s366_s12, %s13_s12  }
   0x2   : > { %p138_p1 = scmp.lt.s32.totalorder %s344_s12, 3 }
   0x4   : > { %p139_p2 = pnand %p310_p0, %p138_p1 }
   0x5   : > { %s311_s16 = sshll.u32 (!%p139_p2), %s306_s13, 3 }
   0x6   : > { %142 = sbr.rel (%p139_p2) target bundleno = 162 (0xa2), region = 32  ;;  %p163_p3 = scmp.lt.s32.totalorder (!%p139_p2), %s311_s16, 15 }
   0xb   : > { %v325_v0 = vld [vmem:[%s398_s1] sm:$0xff]  ;;  %s402_s16 = smov (!%p163_p3, %s311_s16), 15  ;;  %vm199_vm0 = vcmask 130048   ;;  %vm241_vm1 = vcmask 261120  }
   0xc   : > { %219 = vmatpush.bf16.msra.mxu0 %v325_v0  ;;  %326 = vmatpush.bf16.msra.mxu1 %v325_v0  ;;  %s312_s17 = sshll.u32 %s402_s16, 3  ;;  %v337_v13 = vld [vmem:[%s399_s2] ss:$0 sm:$0xff] }
   0xd   : > { %327 = vmatpush.bf16.msra.mxu2 %v325_v0  ;;  %328 = vmatpush.bf16.msra.mxu3 %v325_v0  ;;  %s166_s20 = scalar_lea.vmem %s397_s0, %s312_s17  ;;  %s172_s25 = scalar_lea.vmem %s400_s3, %s312_s17 }
   0xe   : > { %v175_v1 = vld [vmem:[%s166_s20] sm:$0xff]  ;;  %v176_v2 = vld [vmem:[%s166_s20 + $0x8] sm:$0xff]  ;;  %v177_v3 = vld [vmem:[%s166_s20 + $0x10] sm:$0xff] }
   0xf   : > { %v183_v4 = vpack.c.bf16 %v176_v2, %v175_v1  ;;  %v178_v5 = vld [vmem:[%s166_s20 + $0x18] sm:$0xff]  ;;  %v179_v6 = vld [vmem:[%s166_s20 + $0x20] sm:$0xff]  ;;  %v180_v7 = vld [vmem:[%s166_s20 + $0x28] sm:$0xff] }
  0x10   : > { %v184_v8 = vpack.c.bf16 %v178_v5, %v177_v3  ;;  %v185_v9 = vpack.c.bf16 %v180_v7, %v179_v6  ;;  %v181_v10 = vld [vmem:[%s166_s20 + $0x30] sm:$0xff]  ;;  %v182_v11 = vld [vmem:[%s166_s20 + $0x38] sm:$0xff] }
  0x11   : > { %319 = vmatmul.msk.bf16.vlgmr.msra.gmra.mxu0 %vm199_vm0, %v183_v4  ;;  %v186_v12 = vpack.c.bf16 %v182_v11, %v181_v10 }
  0x12   : > { %320 = vmatmul.msk.bf16.vlgmr.msra.gmra.mxu1 %vm199_vm0, %v184_v8  ;;  %321 = vmatmul.msk.bf16.vlgmr.msra.gmra.mxu2 %vm199_vm0, %v185_v9 }
  0x13   : > { %322 = vmatmul.msk.bf16.vlgmr.msra.gmra.mxu3 %vm199_vm0, %v186_v12 }
  0x8e   : > { %v221_v14 = vpop.f32.mrf.mxu0 }
  0x8f   : > { %v222_v15 = vadd.f32 %v337_v13, %v221_v14  ;;  %v226_v16 = vpop.f32.mrf.mxu1 }
  0x90   : > { %v227_v17 = vadd.f32 %v337_v13, %v226_v16 }
  0x91   : > { %242 = vst.msk [vmem:[%s172_s25] sm:$0xff] %vm241_vm1, %v222_v15 }
  0x92   : > { %244 = vst.msk [vmem:[%s172_s25 + $0x10] sm:$0xff] %vm241_vm1, %v227_v17 }
  0x95   : > { %v231_v18 = vpop.f32.mrf.mxu2 }
  0x96   : > { %v232_v19 = vadd.f32 %v337_v13, %v231_v18  ;;  %v236_v20 = vpop.f32.mrf.mxu3  ;;  %v223_v21 = vpop.f32.mrf.mxu0 }
  0x97   : > { %v237_v22 = vadd.f32 %v337_v13, %v236_v20  ;;  %v224_v23 = vadd.f32 %v337_v13, %v223_v21  ;;  %v228_v24 = vpop.f32.mrf.mxu1 }
  0x98   : > { %246 = vst.msk [vmem:[%s172_s25 + $0x20] sm:$0xff] %vm241_vm1, %v232_v19  ;;  %v229_v25 = vadd.f32 %v337_v13, %v228_v24 }
  0x99   : > { %248 = vst.msk [vmem:[%s172_s25 + $0x30] sm:$0xff] %vm241_vm1, %v237_v22 }
  0x9a   : > { %243 = vst.msk [vmem:[%s172_s25 + $0x8] sm:$0xff] %vm241_vm1, %v224_v23 }
  0x9b   : > { %245 = vst.msk [vmem:[%s172_s25 + $0x18] sm:$0xff] %vm241_vm1, %v229_v25 }
  0x9d   : > { %v233_v26 = vpop.f32.mrf.mxu2 }
  0x9e   : > { %v234_v27 = vadd.f32 %v337_v13, %v233_v26  ;;  %v238_v28 = vpop.f32.mrf.mxu3 }
  0x9f   : > { %v239_v29 = vadd.f32 %v337_v13, %v238_v28 }
  0xa0   : > { %247 = vst.msk [vmem:[%s172_s25 + $0x28] sm:$0xff] %vm241_vm1, %v234_v27 }
  0xa1   : > { %249 = vst.msk [vmem:[%s172_s25 + $0x38] sm:$0xff] %vm241_vm1, %v239_v29 }
  0xa2 PF: > { %s13_s12 = sadd.s32 1, %s344_s12  }
  0xa3   : > { %p10_p4 = scmp.ge.s32.totalorder %s13_s12, 4  }
  0xa5   :  { %12 = sbr.rel (!%p10_p4) target bundleno = 1 (0x1), region = 62 }

</bundles_post_ra>
